<compile_context>
chip_gen: v7x
topology: tpu7x:2x2x1
jax: 0.10.0
libtpu: 0.0.40
codegen_flags: <defaults>
</compile_context>

<pallas_src>
import jax
import jax.numpy as jnp
from jax.experimental import pallas as pl
from jax.experimental.pallas import tpu as pltpu

_BF16_SUBLANE = 16                     # bf16 min sublane tile
_TB_MAX = 4096                         # per review: 2048–4096 amortizes step overhead
_VMEM_TILE_BUDGET = 12 * 1024 * 1024   # keeps tiles under v5e's 16 MiB scoped default
_VMEM_LIMIT_BYTES = 32 * 1024 * 1024   # safe on v5e/v6e (128 MiB phys) and v7x (64 MiB)


def _fused_linear_kernel(x_ref, w_ref, b_ref, o_ref):
    # One MXU matmul (bf16 operands, f32 accumulation), f32 bias add on the VPU.
    o_ref[...] = (
        jnp.dot(x_ref[...], w_ref[...], preferred_element_type=jnp.float32)
        + b_ref[...]
    ).astype(o_ref.dtype)


def _round_up(n, m):
    return ((n + m - 1) // m) * m


def _choose_tb(B, F, C):
    """Batch-tile rows: VMEM-aware, bf16-sublane aligned, >=2 grid steps if possible."""
    if B <= _BF16_SUBLANE:
        # Single block whose dims equal the full array dims (always legal).
        return B
    # Double-buffered per-row bytes: bf16 x row + f32 out row.
    per_row = 2 * (F * 2 + C * 4)
    resident = F * C * 2 + C * 4                      # fused W (bf16) + bias (f32)
    budget = max(_VMEM_TILE_BUDGET - resident, per_row * _BF16_SUBLANE)
    tb_cap = max(_BF16_SUBLANE, (budget // per_row) // _BF16_SUBLANE * _BF16_SUBLANE)
    tb_cap = min(tb_cap, _TB_MAX)
    # >= 2 grid steps so ("parallel",) can shard the batch axis across v7x's 2 TCs.
    return min(tb_cap, _round_up(pl.cdiv(B, 2), _BF16_SUBLANE))


def normal_classifier_d(x, params):
    """x: [B, num_features] f32. params: transposed per-layer weights + biases."""
    w1t, b1, w2t, b2, w3t, b3 = (
        params["w1t"], params["b1"], params["w2t"],
        params["b2"], params["w3t"], params["b3"],
    )
    B, F = x.shape
    C = w3t.shape[1]

    # --- Fold the ReLU-less affine chain into a single weight/bias ----------
    # (forward() applies no nonlinearity; fold at HIGHEST precision so the
    #  reassociation doesn't drift vs the 3-layer chain).
    hp = jax.lax.Precision.HIGHEST
    w_fused = jnp.dot(jnp.dot(w1t, w2t, precision=hp), w3t, precision=hp)   # [F, C]
    b_fused = jnp.dot(jnp.dot(b1, w2t, precision=hp) + b2, w3t,
                      precision=hp) + b3                                     # [1, C]

    # --- bf16 operands (halves x DMA bytes); accumulation stays f32 ---------
    x_bf16 = x.astype(jnp.bfloat16)
    w_bf16 = w_fused.astype(jnp.bfloat16)
    b_f32 = b_fused.astype(jnp.float32)

    # --- Batch tiling (no wrapper-side padding; ragged last block is masked) -
    TB = _choose_tb(B, F, C)
    grid = (pl.cdiv(B, TB),)

    cost = pl.CostEstimate(
        flops=2 * B * F * C,
        transcendentals=0,
        bytes_accessed=B * F * 2 + F * C * 2 + C * 4 + B * C * 4,
    )

    out = pl.pallas_call(
        _fused_linear_kernel,
        out_shape=jax.ShapeDtypeStruct((B, C), jnp.float32),
        grid=grid,
        in_specs=[
            pl.BlockSpec((TB, F), lambda i: (i, 0)),   # x tile (pipelined, bf16)
            pl.BlockSpec((F, C), lambda i: (0, 0)),    # fused W (resident, bf16)
            pl.BlockSpec((1, C), lambda i: (0, 0)),    # fused b (resident, f32)
        ],
        out_specs=pl.BlockSpec((TB, C), lambda i: (i, 0)),   # unpadded C
        compiler_params=pltpu.CompilerParams(
            dimension_semantics=("parallel",),         # v7x: batch split over 2 TCs
            vmem_limit_bytes=_VMEM_LIMIT_BYTES,
        ),
        cost_estimate=cost,
    )(x_bf16, w_bf16, b_f32)

    return out


def init_params(key, num_features, num_classes):
    """Deterministic PyTorch-Linear-style init: U(-1/sqrt(fan_in), 1/sqrt(fan_in))."""
    def linear(key, fan_in, fan_out):
        kw, kb = jax.random.split(key)
        bound = 1.0 / jnp.sqrt(jnp.float32(fan_in))
        # PyTorch stores weight as [out, in]; we keep the transposed [in, out]
        # layout so the kernel does x @ W^T directly.
        wt = jax.random.uniform(kw, (fan_in, fan_out), jnp.float32, -bound, bound)
        b = jax.random.uniform(kb, (1, fan_out), jnp.float32, -bound, bound)
        return wt, b

    k1, k2, k3 = jax.random.split(key, 3)
    w1t, b1 = linear(k1, num_features, 128)
    w2t, b2 = linear(k2, 128, 64)
    w3t, b3 = linear(k3, 64, num_classes)
    return {"w1t": w1t, "b1": b1, "w2t": w2t, "b2": b2, "w3t": w3t, "b3": b3}


def reference(x, p):
    # Exact 3-layer affine chain, matching the PyTorch forward() (no ReLUs).
    h1 = x @ p["w1t"] + p["b1"]
    h2 = h1 @ p["w2t"] + p["b2"]
    return h2 @ p["w3t"] + p["b3"]


if __name__ == "__main__":
    key = jax.random.PRNGKey(0)
    kx, kp = jax.random.split(key)

    batch = 8
    num_features = 32
    num_classes = 10

    x = jax.random.normal(kx, (batch, num_features), jnp.float32)
    params = init_params(kp, num_features, num_classes)

    out = normal_classifier_d(x, params)
    out = jax.block_until_ready(out)

    ref = reference(x, params)
    assert out.shape == (batch, num_classes)
    # bf16 operands => ~0.4% relative rounding; outputs are O(0.2), so 2e-2 is ample.
    assert jnp.allclose(out, ref, atol=2e-2, rtol=2e-2), "mismatch vs JAX reference"

    print("KERNEL_OK")
</pallas_src>

<mosaic_0001>
module attributes {stable_mosaic.version = 11 : i64} {
  func.func @_fused_linear_kernel(%arg0: i32, %arg1: memref<8x32xbf16, #tpu.memory_space<vmem>>, %arg2: memref<32x10xbf16, #tpu.memory_space<vmem>>, %arg3: memref<1x10xf32, #tpu.memory_space<vmem>>, %arg4: memref<8x10xf32, #tpu.memory_space<vmem>>) attributes {dimension_semantics = [#tpu.dimension_semantics<parallel>], iteration_bounds = array<i64: 1>, scalar_prefetch = 0 : i64, scratch_operands = 0 : i64, tpu.core_type = #tpu.core_type<tc>, window_params = [{transform_indices = @transform_0, window_bounds = array<i64: 8, 32>}, {pipeline_mode = #tpu.pipeline_mode<synchronous>, transform_indices = @transform_1, window_bounds = array<i64: 32, 10>}, {pipeline_mode = #tpu.pipeline_mode<synchronous>, transform_indices = @transform_2, window_bounds = array<i64: 1, 10>}, {transform_indices = @transform_3, window_bounds = array<i64: 8, 10>}]} {
    %c0 = arith.constant 0 : index
    %c0_0 = arith.constant 0 : index
    %0 = vector.load %arg1[%c0, %c0_0] : memref<8x32xbf16, #tpu.memory_space<vmem>>, vector<8x32xbf16>
    %c0_1 = arith.constant 0 : index
    %c0_2 = arith.constant 0 : index
    %1 = vector.load %arg2[%c0_1, %c0_2] : memref<32x10xbf16, #tpu.memory_space<vmem>>, vector<32x10xbf16>
    %cst = arith.constant dense<0.000000e+00> : vector<8x10xf32>
    %2 = tpu.matmul %0, %1, %cst {dimension_numbers = #tpu.dot_dimension_numbers<[1], [0], [0], [1], [0, 0, 1, 1], [], []>} : vector<8x32xbf16>, vector<32x10xbf16>, vector<8x10xf32> -> vector<8x10xf32>
    %c0_3 = arith.constant 0 : index
    %c0_4 = arith.constant 0 : index
    %3 = vector.load %arg3[%c0_3, %c0_4] : memref<1x10xf32, #tpu.memory_space<vmem>>, vector<1x10xf32>
    %4 = vector.broadcast %3 : vector<1x10xf32> to vector<8x10xf32>
    %5 = arith.addf %2, %4 : vector<8x10xf32>
    %c0_5 = arith.constant 0 : index
    %c0_6 = arith.constant 0 : index
    %6 = vector.load %arg4[%c0_5, %c0_6] : memref<8x10xf32, #tpu.memory_space<vmem>>, vector<8x10xf32>
    tpu.vector_store %arg4[%c0_5, %c0_6], %5 {strides = array<i32>} : memref<8x10xf32, #tpu.memory_space<vmem>>, vector<8x10xf32>,
    return
  }
  func.func @transform_0(%arg0: i32) -> (i32, i32) {
    %c0_i32 = arith.constant 0 : i32
    %c0_i32_0 = arith.constant 0 : i32
    return %arg0, %c0_i32 : i32, i32
  }
  func.func @transform_1(%arg0: i32) -> (i32, i32) {
    %c0_i32 = arith.constant 0 : i32
    %c0_i32_0 = arith.constant 0 : i32
    %c0_i32_1 = arith.constant 0 : i32
    return %c0_i32, %c0_i32_0 : i32, i32
  }
  func.func @transform_2(%arg0: i32) -> (i32, i32) {
    %c0_i32 = arith.constant 0 : i32
    %c0_i32_0 = arith.constant 0 : i32
    %c0_i32_1 = arith.constant 0 : i32
    return %c0_i32, %c0_i32_0 : i32, i32
  }
  func.func @transform_3(%arg0: i32) -> (i32, i32) {
    %c0_i32 = arith.constant 0 : i32
    %c0_i32_0 = arith.constant 0 : i32
    return %arg0, %c0_i32 : i32, i32
  }
}

</mosaic_0001>

<bundles_post_ra>
// kernel: tpu_custom_call.1
= control target key start
LH: loop header
LB: loop body
LE: loop exit
PB: predicated region body
PF: predicated region fallthrough
CT: control target
= control target key end

     0   :  { %v144_v1 = vmov 0.0   ;;  %vm145_vm0 = vmmov 0   ;;  %s191_s0 = inlined_call_operand.vmem [shape: bf16[8,32], index: 0, kind: input, shape index: {}]   ;;  %s192_s1 = inlined_call_operand.vmem [shape: bf16[32,10], index: 1, kind: input, shape index: {}]   ;;  %s193_s2 = inlined_call_operand.vmem [shape: f32[1,10], index: 2, kind: input, shape index: {}]   ;;  %s194_s3 = inlined_call_operand.hbm [shape: f32[8,10], index: 3, kind: output, shape index: {}]  }
   0x1   :  { %v118_v0 = vld [vmem:[%s192_s1] sm:$0xff]   ;;  %107 = vmatprep.subr.bf16.mxu0 %v144_v1  ;;  %v119_v2 = vld [vmem:[%s192_s1 + $0x8] sm:$0xff]   ;;  %111 = vmatprep.mubr.msk.bf16.mxu0 %vm145_vm0, %v144_v1 }
   0x2   :  { %108 = vmatpush3.bf16.msra.mxu0 %v118_v0 }
   0x3   :  { %109 = vmatprep.subr.bf16.mxu0 %v144_v1 }
   0x4   :  { %8 = vsyncpa [#allocation3], 0  ;;  %v16_v3 = vld [vmem:[%s191_s0] sm:$0xf]  ;;  %vm40_vm1 = vcmask 261120   ;;  %s146_s20 = smov [#allocation2]  }
   0x5   :  { %v100_v4 = vld [vmem:[%s193_s2] ss:$0 sm:$0xff]  ;;  %s92_s21 = sshll.u32 %s146_s20, 4  ;;  %vm84_vm2 = vcmask 80896   ;;  %s93_s21 = int_to_ptr.vmem [resolvable:$true] %s92_s21 }
   0x6   :  { %110 = vmatpush3.bf16.msra.mxu0 %v119_v2  ;;  %s120_s1 = scalar_lea.vmem %s93_s21, 128  ;;  %p125_p1 = scmp.lt.s32.totalorder %s93_s21, %s93_s21 }
   0x7   :  { %p121_p0 = scmp.ne.s32.totalorder %s93_s21, %s120_s1  ;;  %p126_p2 = scmp.lt.s32.totalorder %s120_s1, %s120_s1 }
   0x9   :  { %112 = vmatmul.mubr.msk.bf16.vlgmr.msra.gmra.mrb[0].mxu0 %vm40_vm1, %v16_v3  ;;  %p127_p3 = por %p126_p2, %p125_p1 }
   0xb   :  { %p128_p4 = pnand %p127_p3, %p121_p0 }
  0xdc   :  { %v78_v5 = vpop.f32.mrb[0].mxu0 }
  0xdd   :  { %v79_v6 = vadd.f32 %v100_v4, %v78_v5  ;;  %v113_v7 = vpop.f32.mrb[1].mxu0 }
  0xde   :  { %v81_v8 = vpop.f32.mrb[2].mxu0 }
  0xdf   :  { %v114_v9 = vpop.f32.mrb[3].mxu0  ;;  %85 = vst.msk [vmem:[#allocation2] sm:$0xff] %vm84_vm2, %v79_v6 }
  0xe0   :  { %131 = shalt.err (!%p128_p4)
}
  0xe1   :  { %s132_s2 = scalar_lea.hbm %s194_s3, 128 }
  0xe2   :  { %p133_p5 = scmp.ne.s32.totalorder %s194_s3, %s132_s2  ;;  %p136_p6 = scmp.lt.u32.totalorder %s132_s2, %s194_s3 }
  0xe4   :  { %p138_p7 = pnand %p136_p6, %p133_p5 }
  0xe6   :  { %141 = shalt.err (!%p138_p7)
}
  0xe7   :  { %95 = dma.vmem_to_hbm [thread:$0]  %s93_s21, 128, %s194_s3, [#allocation3]  }
  0xe8   :  { %142 = dma.done.wait [#allocation3], 128  }
  0xe9   :  { %143 = vsyncadd [#allocation3], 4294967168 }
  0xea   :  { %99 = vsyncpa [#allocation3], 1 }

</bundles_post_ra>
